<compile_context>
chip_gen: v6e
topology: v6e:2x2x1
jax: 0.10.0
libtpu: 0.0.40
codegen_flags: <defaults>
</compile_context>

<pallas_src>
import functools

import jax
import jax.numpy as jnp
from jax.experimental import pallas as pl
from jax.experimental.pallas import tpu as pltpu


IN_FEATURES = 16
HIDDEN = 120
HIDDEN_PAD = 128   # lane-dense hidden width
OUT_FEATURES = 4
OUT_PAD = 8        # narrow stored output width (sliced back to 4 in wrapper)


def _drone_kernel(x_ref, w1_ref, w23_ref, w4_ref, b_ref, o_ref,
                  *, abits, wbits):
    # x is bf16, normalization already folded into w1/b1 by the wrapper.
    x = x_ref[...]                                            # (tile_b, 16) bf16

    # Layer 1: QLinear(16 -> 128pad) + ReLU  (bf16 MXU, f32 accumulate)
    h = jnp.dot(x, w1_ref[...], preferred_element_type=jnp.float32)
    h = h + b_ref[0:1, :]
    h = jnp.maximum(h, 0.0).astype(jnp.bfloat16)

    # Layer 2: QLinear(128pad -> 128pad) + ReLU
    h = jnp.dot(h, w23_ref[0], preferred_element_type=jnp.float32)
    h = h + b_ref[1:2, :]
    h = jnp.maximum(h, 0.0).astype(jnp.bfloat16)

    # Layer 3: QLinear(128pad -> 128pad) + ReLU
    h = jnp.dot(h, w23_ref[1], preferred_element_type=jnp.float32)
    h = h + b_ref[2:3, :]
    h = jnp.maximum(h, 0.0).astype(jnp.bfloat16)

    # Layer 4: QLinear(128pad -> 8; only the first 4 lanes are real outputs)
    z = jnp.dot(h, w4_ref[...], preferred_element_type=jnp.float32)
    z = z + b_ref[3:4, :OUT_PAD]

    # CustomSigmoid2(abits, wbits)
    aw = jnp.float32(abits * wbits)
    y = aw * 0.5 + jnp.abs(z) * jnp.float32(1.0 / 128.0)
    y = jnp.where(z >= 0, y, aw - y)
    y = jnp.clip(y, 0.0, aw)
    o_ref[...] = (y * (1.0 / aw)).astype(o_ref.dtype)


def _round_up(n, m):
    return (n + m - 1) // m * m


def _pad2(a, rows, cols):
    r, c = a.shape
    return jnp.pad(a, ((0, rows - r), (0, cols - c)))


def drone_forward(x, params, *, x_mean=0.0, x_std=1.0, abits=4, wbits=4,
                  tile_b=4096):
    """x: (B, 16) float32. params: dict of f32 weights/biases (PyTorch Linear
    weights already transposed to (in, out)). Returns (B, 4) float32."""
    B, F = x.shape
    assert F == IN_FEATURES
    assert x_std != 0.0, "X_std=0 is a division by zero in the original module"

    # --- fold (x - mean)/std into the first layer (exact for scalar mean/std) ---
    inv_std = 1.0 / float(x_std)
    w1_eff = params["w1"] * inv_std                                   # (16, 120)
    b1_eff = params["b1"] - (float(x_mean) * inv_std) * jnp.sum(
        params["w1"], axis=0, keepdims=True)                          # (1, 120)

    # --- pad params to lane-dense widths; weights stored bf16 for the MXU ---
    w1 = _pad2(w1_eff, IN_FEATURES, HIDDEN_PAD).astype(jnp.bfloat16)
    w23 = jnp.stack([
        _pad2(params["w2"], HIDDEN_PAD, HIDDEN_PAD),
        _pad2(params["w3"], HIDDEN_PAD, HIDDEN_PAD),
    ]).astype(jnp.bfloat16)                                           # (2,128,128)
    w4 = _pad2(params["w4"], HIDDEN_PAD, OUT_PAD).astype(jnp.bfloat16)

    # Pack the four bias rows into one (8, 128) f32 operand (rows 0-3 real).
    biases = jnp.zeros((8, HIDDEN_PAD), jnp.float32)
    biases = biases.at[0, :HIDDEN].set(b1_eff[0])
    biases = biases.at[1, :HIDDEN].set(params["b2"][0])
    biases = biases.at[2, :HIDDEN].set(params["b3"][0])
    biases = biases.at[3, :OUT_FEATURES].set(params["b4"][0])

    # --- batch tiling: big tiles to amortize per-step overhead ---
    tile_b = max(8, min(tile_b, _round_up(B, 8)))
    # Prefer >= 2 grid steps so v7x's 2 TensorCores both get work.
    if B > 8 and _round_up(B, tile_b) // tile_b < 2:
        tile_b = max(8, _round_up((B + 1) // 2, 8))
    b_pad = _round_up(B, tile_b)

    x = x.astype(jnp.bfloat16)
    if b_pad != B:
        x = jnp.pad(x, ((0, b_pad - B), (0, 0)))
    grid = (b_pad // tile_b,)

    kernel = functools.partial(_drone_kernel, abits=abits, wbits=wbits)

    const2 = lambda i: (0, 0)   # weights/biases resident across all grid steps
    const3 = lambda i: (0, 0, 0)

    out = pl.pallas_call(
        kernel,
        out_shape=jax.ShapeDtypeStruct((b_pad, OUT_PAD), jnp.float32),
        grid=grid,
        in_specs=[
            pl.BlockSpec((tile_b, IN_FEATURES), lambda i: (i, 0)),      # x tile
            pl.BlockSpec((IN_FEATURES, HIDDEN_PAD), const2),            # w1
            pl.BlockSpec((2, HIDDEN_PAD, HIDDEN_PAD), const3),          # w2, w3
            pl.BlockSpec((HIDDEN_PAD, OUT_PAD), const2),                # w4
            pl.BlockSpec((8, HIDDEN_PAD), const2),                      # biases
        ],
        out_specs=pl.BlockSpec((tile_b, OUT_PAD), lambda i: (i, 0)),
        compiler_params=pltpu.CompilerParams(
            dimension_semantics=("parallel",),
            vmem_limit_bytes=40 * 1024 * 1024),
    )(x, w1, w23, w4, biases)

    return out[:B, :OUT_FEATURES]


def init_params(key):
    """Deterministic synthetic parameters matching the module's layer shapes."""
    ks = jax.random.split(key, 8)

    def lin(kw, kb, fan_in, fan_out):
        scale = 1.0 / jnp.sqrt(jnp.float32(fan_in))
        # stored as (in, out): transpose of PyTorch's (out, in) Linear weight
        w = jax.random.uniform(kw, (fan_in, fan_out), jnp.float32, -scale, scale)
        b = jax.random.uniform(kb, (1, fan_out), jnp.float32, -scale, scale)
        return w, b

    w1, b1 = lin(ks[0], ks[1], IN_FEATURES, HIDDEN)
    w2, b2 = lin(ks[2], ks[3], HIDDEN, HIDDEN)
    w3, b3 = lin(ks[4], ks[5], HIDDEN, HIDDEN)
    w4, b4 = lin(ks[6], ks[7], HIDDEN, OUT_FEATURES)
    return dict(w1=w1, b1=b1, w2=w2, b2=b2, w3=w3, b3=b3, w4=w4, b4=b4)


def drone_reference(x, params, *, x_mean=0.0, x_std=1.0, abits=4, wbits=4):
    """Pure-JAX f32 reference for correctness checking."""
    h = (x - x_mean) / x_std
    h = jnp.maximum(h @ params["w1"] + params["b1"], 0.0)
    h = jnp.maximum(h @ params["w2"] + params["b2"], 0.0)
    h = jnp.maximum(h @ params["w3"] + params["b3"], 0.0)
    z = h @ params["w4"] + params["b4"]
    aw = float(abits * wbits)
    y = aw / 2.0 + jnp.abs(z) / 128.0
    y = jnp.where(z >= 0, y, aw - y)
    y = jnp.clip(y, 0.0, aw)
    return y / aw


if __name__ == "__main__":
    key = jax.random.PRNGKey(0)
    k_x, k_x2, k_p = jax.random.split(key, 3)

    params = init_params(k_p)

    # Note: the module defaults X_std=0 (division by zero); use std=1.0 here.
    # Case 1: tiny batch (single grid step).
    batch = 8
    x = jax.random.normal(k_x, (batch, IN_FEATURES), jnp.float32)
    out = drone_forward(x, params, x_mean=0.5, x_std=2.0, abits=4, wbits=4)
    out = jax.block_until_ready(out)
    ref = drone_reference(x, params, x_mean=0.5, x_std=2.0, abits=4, wbits=4)
    assert out.shape == (batch, OUT_FEATURES)
    # bf16 matmul inputs + f32 accumulation; the sigmoid divides |z| by
    # 128*abits*wbits, so output error is << 1e-3.
    assert jnp.allclose(out, ref, atol=2e-3, rtol=1e-3), "mismatch vs reference (B=8)"

    # Case 2: ragged batch (exercises padding + the >=2-step grid path).
    batch2 = 50
    x2 = jax.random.normal(k_x2, (batch2, IN_FEATURES), jnp.float32)
    out2 = drone_forward(x2, params, x_mean=0.0, x_std=1.0, abits=4, wbits=4)
    out2 = jax.block_until_ready(out2)
    ref2 = drone_reference(x2, params, x_mean=0.0, x_std=1.0, abits=4, wbits=4)
    assert out2.shape == (batch2, OUT_FEATURES)
    assert jnp.allclose(out2, ref2, atol=2e-3, rtol=1e-3), "mismatch vs reference (B=50)"

    print("KERNEL_OK")
</pallas_src>

<mosaic_0001>
module attributes {stable_mosaic.version = 11 : i64} {
  func.func @_drone_kernel(%arg0: i32, %arg1: memref<8x16xbf16, #tpu.memory_space<vmem>>, %arg2: memref<16x128xbf16, #tpu.memory_space<vmem>>, %arg3: memref<2x128x128xbf16, #tpu.memory_space<vmem>>, %arg4: memref<128x8xbf16, #tpu.memory_space<vmem>>, %arg5: memref<8x128xf32, #tpu.memory_space<vmem>>, %arg6: memref<8x8xf32, #tpu.memory_space<vmem>>) attributes {dimension_semantics = [#tpu.dimension_semantics<parallel>], iteration_bounds = array<i64: 1>, scalar_prefetch = 0 : i64, scratch_operands = 0 : i64, tpu.core_type = #tpu.core_type<tc>, window_params = [{transform_indices = @transform_0, window_bounds = array<i64: 8, 16>}, {pipeline_mode = #tpu.pipeline_mode<synchronous>, transform_indices = @transform_1, window_bounds = array<i64: 16, 128>}, {pipeline_mode = #tpu.pipeline_mode<synchronous>, transform_indices = @transform_2, window_bounds = array<i64: 2, 128, 128>}, {pipeline_mode = #tpu.pipeline_mode<synchronous>, transform_indices = @transform_3, window_bounds = array<i64: 128, 8>}, {pipeline_mode = #tpu.pipeline_mode<synchronous>, transform_indices = @transform_4, window_bounds = array<i64: 8, 128>}, {transform_indices = @transform_5, window_bounds = array<i64: 8, 8>}]} {
    %c0 = arith.constant 0 : index
    %c0_0 = arith.constant 0 : index
    %0 = vector.load %arg1[%c0, %c0_0] : memref<8x16xbf16, #tpu.memory_space<vmem>>, vector<8x16xbf16>
    %c0_1 = arith.constant 0 : index
    %c0_2 = arith.constant 0 : index
    %1 = vector.load %arg2[%c0_1, %c0_2] : memref<16x128xbf16, #tpu.memory_space<vmem>>, vector<16x128xbf16>
    %cst = arith.constant dense<0.000000e+00> : vector<8x128xf32>
    %2 = tpu.matmul %0, %1, %cst {dimension_numbers = #tpu.dot_dimension_numbers<[1], [0], [0], [1], [0, 0, 1, 1], [], []>} : vector<8x16xbf16>, vector<16x128xbf16>, vector<8x128xf32> -> vector<8x128xf32>
    %c0_3 = arith.constant 0 : index
    %c0_4 = arith.constant 0 : index
    %3 = vector.load %arg5[%c0_3, %c0_4] : memref<8x128xf32, #tpu.memory_space<vmem>>, vector<1x128xf32>
    %4 = vector.broadcast %3 : vector<1x128xf32> to vector<8x128xf32>
    %5 = arith.addf %2, %4 : vector<8x128xf32>
    %cst_5 = arith.constant 0.000000e+00 : f32
    %6 = vector.broadcast %cst_5 : f32 to vector<8x128xf32>
    %7 = arith.maximumf %5, %6 : vector<8x128xf32>
    %8 = arith.truncf %7 : vector<8x128xf32> to vector<8x128xbf16>
    %c0_6 = arith.constant 0 : index
    %c0_7 = arith.constant 0 : index
    %c0_8 = arith.constant 0 : index
    %9 = vector.load %arg3[%c0_6, %c0_7, %c0_8] : memref<2x128x128xbf16, #tpu.memory_space<vmem>>, vector<1x128x128xbf16>
    %10 = vector.shape_cast %9 : vector<1x128x128xbf16> to vector<128x128xbf16>
    %cst_9 = arith.constant dense<0.000000e+00> : vector<8x128xf32>
    %11 = tpu.matmul %8, %10, %cst_9 {dimension_numbers = #tpu.dot_dimension_numbers<[1], [0], [0], [1], [0, 0, 1, 1], [], []>} : vector<8x128xbf16>, vector<128x128xbf16>, vector<8x128xf32> -> vector<8x128xf32>
    %c1 = arith.constant 1 : index
    %c0_10 = arith.constant 0 : index
    %12 = vector.load %arg5[%c1, %c0_10] : memref<8x128xf32, #tpu.memory_space<vmem>>, vector<1x128xf32>
    %13 = vector.broadcast %12 : vector<1x128xf32> to vector<8x128xf32>
    %14 = arith.addf %11, %13 : vector<8x128xf32>
    %cst_11 = arith.constant 0.000000e+00 : f32
    %15 = vector.broadcast %cst_11 : f32 to vector<8x128xf32>
    %16 = arith.maximumf %14, %15 : vector<8x128xf32>
    %17 = arith.truncf %16 : vector<8x128xf32> to vector<8x128xbf16>
    %c1_12 = arith.constant 1 : index
    %c0_13 = arith.constant 0 : index
    %c0_14 = arith.constant 0 : index
    %18 = vector.load %arg3[%c1_12, %c0_13, %c0_14] : memref<2x128x128xbf16, #tpu.memory_space<vmem>>, vector<1x128x128xbf16>
    %19 = vector.shape_cast %18 : vector<1x128x128xbf16> to vector<128x128xbf16>
    %cst_15 = arith.constant dense<0.000000e+00> : vector<8x128xf32>
    %20 = tpu.matmul %17, %19, %cst_15 {dimension_numbers = #tpu.dot_dimension_numbers<[1], [0], [0], [1], [0, 0, 1, 1], [], []>} : vector<8x128xbf16>, vector<128x128xbf16>, vector<8x128xf32> -> vector<8x128xf32>
    %c2 = arith.constant 2 : index
    %c0_16 = arith.constant 0 : index
    %21 = vector.load %arg5[%c2, %c0_16] : memref<8x128xf32, #tpu.memory_space<vmem>>, vector<1x128xf32>
    %22 = vector.broadcast %21 : vector<1x128xf32> to vector<8x128xf32>
    %23 = arith.addf %20, %22 : vector<8x128xf32>
    %cst_17 = arith.constant 0.000000e+00 : f32
    %24 = vector.broadcast %cst_17 : f32 to vector<8x128xf32>
    %25 = arith.maximumf %23, %24 : vector<8x128xf32>
    %26 = arith.truncf %25 : vector<8x128xf32> to vector<8x128xbf16>
    %c0_18 = arith.constant 0 : index
    %c0_19 = arith.constant 0 : index
    %27 = vector.load %arg4[%c0_18, %c0_19] : memref<128x8xbf16, #tpu.memory_space<vmem>>, vector<128x8xbf16>
    %cst_20 = arith.constant dense<0.000000e+00> : vector<8x8xf32>
    %28 = tpu.matmul %26, %27, %cst_20 {dimension_numbers = #tpu.dot_dimension_numbers<[1], [0], [0], [1], [0, 0, 1, 1], [], []>} : vector<8x128xbf16>, vector<128x8xbf16>, vector<8x8xf32> -> vector<8x8xf32>
    %c3 = arith.constant 3 : index
    %c0_21 = arith.constant 0 : index
    %29 = vector.load %arg5[%c3, %c0_21] : memref<8x128xf32, #tpu.memory_space<vmem>>, vector<1x8xf32>
    %30 = vector.broadcast %29 : vector<1x8xf32> to vector<8x8xf32>
    %31 = arith.addf %28, %30 : vector<8x8xf32>
    %cst_22 = arith.constant 1.600000e+01 : f32
    %cst_23 = arith.constant 5.000000e-01 : f32
    %32 = arith.mulf %cst_22, %cst_23 : f32
    %33 = math.absf %31 : vector<8x8xf32>
    %cst_24 = arith.constant 7.812500e-03 : f32
    %34 = vector.broadcast %cst_24 : f32 to vector<8x8xf32>
    %35 = arith.mulf %33, %34 : vector<8x8xf32>
    %36 = vector.broadcast %32 : f32 to vector<8x8xf32>
    %37 = arith.addf %36, %35 : vector<8x8xf32>
    %cst_25 = arith.constant 0.000000e+00 : f32
    %38 = vector.broadcast %cst_25 : f32 to vector<8x8xf32>
    %39 = arith.cmpf oge, %31, %38 : vector<8x8xf32>
    %cst_26 = arith.constant 1.600000e+01 : f32
    %40 = vector.broadcast %cst_26 : f32 to vector<8x8xf32>
    %41 = arith.subf %40, %37 : vector<8x8xf32>
    %42 = arith.select %39, %37, %41 : vector<8x8xi1>, vector<8x8xf32>
    %cst_27 = arith.constant 0.000000e+00 : f32
    %cst_28 = arith.constant 1.600000e+01 : f32
    %43 = vector.broadcast %cst_27 : f32 to vector<8x8xf32>
    %44 = arith.maximumf %43, %42 : vector<8x8xf32>
    %45 = vector.broadcast %cst_28 : f32 to vector<8x8xf32>
    %46 = arith.minimumf %45, %44 : vector<8x8xf32>
    %cst_29 = arith.constant 1.000000e+00 : f32
    %cst_30 = arith.constant 1.600000e+01 : f32
    %47 = arith.divf %cst_29, %cst_30 : f32
    %48 = vector.broadcast %47 : f32 to vector<8x8xf32>
    %49 = arith.mulf %46, %48 : vector<8x8xf32>
    %c0_31 = arith.constant 0 : index
    %c0_32 = arith.constant 0 : index
    %50 = vector.load %arg6[%c0_31, %c0_32] : memref<8x8xf32, #tpu.memory_space<vmem>>, vector<8x8xf32>
    tpu.vector_store %arg6[%c0_31, %c0_32], %49 {strides = array<i32>} : memref<8x8xf32, #tpu.memory_space<vmem>>, vector<8x8xf32>,
    return
  }
  func.func @transform_0(%arg0: i32) -> (i32, i32) {
    %c0_i32 = arith.constant 0 : i32
    %c0_i32_0 = arith.constant 0 : i32
    return %arg0, %c0_i32 : i32, i32
  }
  func.func @transform_1(%arg0: i32) -> (i32, i32) {
    %c0_i32 = arith.constant 0 : i32
    %c0_i32_0 = arith.constant 0 : i32
    %c0_i32_1 = arith.constant 0 : i32
    return %c0_i32, %c0_i32_0 : i32, i32
  }
  func.func @transform_2(%arg0: i32) -> (i32, i32, i32) {
    %c0_i32 = arith.constant 0 : i32
    %c0_i32_0 = arith.constant 0 : i32
    %c0_i32_1 = arith.constant 0 : i32
    %c0_i32_2 = arith.constant 0 : i32
    return %c0_i32, %c0_i32_0, %c0_i32_1 : i32, i32, i32
  }
  func.func @transform_3(%arg0: i32) -> (i32, i32) {
    %c0_i32 = arith.constant 0 : i32
    %c0_i32_0 = arith.constant 0 : i32
    %c0_i32_1 = arith.constant 0 : i32
    return %c0_i32, %c0_i32_0 : i32, i32
  }
  func.func @transform_4(%arg0: i32) -> (i32, i32) {
    %c0_i32 = arith.constant 0 : i32
    %c0_i32_0 = arith.constant 0 : i32
    %c0_i32_1 = arith.constant 0 : i32
    return %c0_i32, %c0_i32_0 : i32, i32
  }
  func.func @transform_5(%arg0: i32) -> (i32, i32) {
    %c0_i32 = arith.constant 0 : i32
    %c0_i32_0 = arith.constant 0 : i32
    return %arg0, %c0_i32 : i32, i32
  }
}

</mosaic_0001>

<bundles_post_ra>
// kernel: tpu_custom_call.1
= control target key start
LH: loop header
LB: loop body
LE: loop exit
PB: predicated region body
PF: predicated region fallthrough
CT: control target
= control target key end

     0   :  { %10 = vsyncpa [#allocation3], 0  ;;  %s771_s0 = inlined_call_operand.vmem [shape: bf16[8,16], index: 0, kind: input, shape index: {}]   ;;  %s772_s1 = inlined_call_operand.vmem [shape: bf16[16,128], index: 1, kind: input, shape index: {}]   ;;  %s773_s2 = inlined_call_operand.hbm [shape: bf16[2,128,128], index: 2, kind: input, shape index: {}]   ;;  %s774_s3 = inlined_call_operand.vmem [shape: bf16[128,8], index: 3, kind: input, shape index: {}]   ;;  %s775_s4 = inlined_call_operand.vmem [shape: f32[8,128], index: 4, kind: input, shape index: {}]   ;;  %s776_s5 = inlined_call_operand.hbm [shape: f32[8,8], index: 5, kind: output, shape index: {}]  }
   0x1   :  { %11 = vsyncpa [#allocation4], 0  ;;  %s654_s18 = smov [#allocation2]  }
   0x2   :  { %s21_s19 = sshll.u32 %s654_s18, 4  ;;  %s22_s19 = int_to_ptr.vmem [resolvable:$true] %s21_s19 }
   0x3   :  { %s618_s20 = scalar_lea.vmem %s22_s19, 2048  ;;  %p623_p1 = scmp.lt.s32.totalorder %s22_s19, %s22_s19 }
   0x4   :  { %p619_p0 = scmp.ne.s32.totalorder %s22_s19, %s618_s20  ;;  %p624_p2 = scmp.lt.s32.totalorder %s618_s20, %s618_s20 }
   0x6   :  { %p625_p3 = por %p624_p2, %p623_p1 }
   0x8   :  { %p626_p4 = pnand %p625_p3, %p619_p0 }
   0xa   :  { %629 = shalt.err (!%p626_p4)
}
   0xb   :  { %s655_s21 = smov 64   ;;  %s656_s22 = smov 4  }
   0xc   :  { %27 = dma.hbm_to_vmem [thread:$0]  %s773_s2, 2048, %s22_s19, [#allocation3], %s655_s21, %s655_s21, %s656_s22  }
   0xd   :  { %650 = dma.done.wait [#allocation3], 2048  }
   0xe   :  { %651 = vsyncadd [#allocation3], 4294965248  ;;  %v657_v0 = vmov 0.0   ;;  %vm658_vm0 = vmmov 0   ;;  %v585_v1 = vld [vmem:[%s772_s1] sm:$0xff]   ;;  %vm50_vm1 = vcmask 130048  }
   0xf   :  { %513 = vmatprep.subr.bf16.mxu0 %v657_v0  ;;  %515 = vmatprep.mubr.msk.bf16.mxu0 %vm658_vm0, %v657_v0  ;;  %v36_v2 = vld [vmem:[%s771_s0] sm:$0xf]  ;;  %v586_v3 = vld [vmem:[#allocation2 + $0x38] sm:$0xff]   ;;  %v587_v4 = vld [vmem:[#allocation2 + $0x30] sm:$0xff]   ;;  %vm437_vm3 = vcmask 64512  }
  0x10   :  { %519 = vmatprep.subr.bf16.mxu1 %v657_v0  ;;  %535 = vmatprep.mubr.msk.bf16.mxu1 %vm658_vm0, %v657_v0  ;;  %v588_v5 = vld [vmem:[#allocation2 + $0x28] sm:$0xff]   ;;  %v589_v6 = vld [vmem:[#allocation2 + $0x20] sm:$0xff]   ;;  %v590_v7 = vld [vmem:[#allocation2 + $0x18] sm:$0xff]  }
  0x11   :  { %514 = vmatpush3.bf16.msra.mxu0 %v585_v1  ;;  %520 = vmatpush3.bf16.msra.mxu1 %v586_v3  ;;  %v591_v8 = vld [vmem:[#allocation2 + $0x10] sm:$0xff]   ;;  %v592_v9 = vld [vmem:[#allocation2 + $0x8] sm:$0xff]   ;;  %v593_v10 = vld [vmem:[#allocation2] sm:$0xff]  }
  0x12   :  { %539 = vmatprep.subr.bf16.mxu0 %v657_v0  ;;  %521 = vmatprep.subr.bf16.mxu1 %v657_v0  ;;  %v594_v11 = vld [vmem:[#allocation2 + $0x78] sm:$0xff]   ;;  %v595_v12 = vld [vmem:[#allocation2 + $0x70] sm:$0xff]   ;;  %v596_v13 = vld [vmem:[#allocation2 + $0x68] sm:$0xff]  }
  0x13   :  { %v597_v14 = vld [vmem:[#allocation2 + $0x60] sm:$0xff]   ;;  %v598_v15 = vld [vmem:[#allocation2 + $0x58] sm:$0xff]   ;;  %v599_v16 = vld [vmem:[#allocation2 + $0x50] sm:$0xff]  }
  0x14   :  { %516 = vmatmul.mubr.msk.bf16.vlgmr.msra.gmra.mxu0 %vm50_vm1, %v36_v2  ;;  %v454_v17 = vld [vmem:[%s775_s4] ss:$0 sm:$0xff]  ;;  %v600_v25 = vld [vmem:[#allocation2 + $0x48] sm:$0xff]   ;;  %v602_v27 = vld [vmem:[%s774_s3 + $0x38] sm:$0xff]  }
  0x15   :  { %555 = vmatprep.mubr.msk.bf16.mxu0 %vm658_vm0, %v657_v0  ;;  %522 = vmatpush3.bf16.msra.mxu1 %v587_v4  ;;  %v601_v26 = vld [vmem:[#allocation2 + $0x40] sm:$0xff]   ;;  %v603_v28 = vld [vmem:[%s774_s3 + $0x30] sm:$0xff]   ;;  %v604_v29 = vld [vmem:[%s774_s3 + $0x28] sm:$0xff]  }
  0x16   :  { %523 = vmatprep.subr.bf16.mxu1 %v657_v0  ;;  %540 = vmatpush3.bf16.msra.mxu0 %v594_v11  ;;  %v605_v30 = vld [vmem:[%s774_s3 + $0x20] sm:$0xff]   ;;  %v606_v31 = vld [vmem:[%s774_s3 + $0x18] sm:$0xff]   ;;  %v607_v32 = vld [vmem:[%s774_s3 + $0x10] sm:$0xff]  }
  0x17   :  { %541 = vmatprep.subr.bf16.mxu0 %v657_v0  ;;  %v457_v33 = vld [vmem:[%s775_s4 + $0x1] ss:$0 sm:$0xff]  ;;  %v608_v41 = vld [vmem:[%s774_s3 + $0x8] sm:$0xff]   ;;  %v466_v43 = vld [vmem:[%s775_s4 + $0x2] ss:$0 sm:$0xff] }
  0x18   :  { %v609_v42 = vld [vmem:[%s774_s3] sm:$0xff]   ;;  %s659_s3 = smov [#allocation5]  }
  0x19   :  { %524 = vmatpush3.bf16.msra.mxu1 %v588_v5  ;;  %v475_v51 = vld [vmem:[%s775_s4 + $0x3] ss:$0 sm:$0xff]  ;;  %s445_s25 = sshll.u32 %s659_s3, 4  ;;  %s446_s25 = int_to_ptr.vmem [resolvable:$true] %s445_s25 }
  0x1a   :  { %525 = vmatprep.subr.bf16.mxu1 %v657_v0  ;;  %542 = vmatpush3.bf16.msra.mxu0 %v595_v12  ;;  %s630_s4 = scalar_lea.vmem %s446_s25, 128  ;;  %p635_p6 = scmp.lt.s32.totalorder %s446_s25, %s446_s25 }
  0x1b   :  { %543 = vmatprep.subr.bf16.mxu0 %v657_v0  ;;  %p631_p5 = scmp.ne.s32.totalorder %s446_s25, %s630_s4  ;;  %p636_p7 = scmp.lt.s32.totalorder %s630_s4, %s630_s4 }
  0x1d   :  { %526 = vmatpush3.bf16.msra.mxu1 %v589_v6  ;;  %p637_p8 = por %p636_p7, %p635_p6 }
  0x1e   :  { %527 = vmatprep.subr.bf16.mxu1 %v657_v0  ;;  %544 = vmatpush3.bf16.msra.mxu0 %v596_v13 }
  0x1f   :  { %545 = vmatprep.subr.bf16.mxu0 %v657_v0  ;;  %p638_p9 = pnand %p637_p8, %p631_p5 }
  0x21   :  { %528 = vmatpush3.bf16.msra.mxu1 %v590_v7 }
  0x22   :  { %529 = vmatprep.subr.bf16.mxu1 %v657_v0  ;;  %546 = vmatpush3.bf16.msra.mxu0 %v597_v14 }
  0x23   :  { %547 = vmatprep.subr.bf16.mxu0 %v657_v0 }
  0x25   :  { %530 = vmatpush3.bf16.msra.mxu1 %v591_v8 }
  0x26   :  { %531 = vmatprep.subr.bf16.mxu1 %v657_v0  ;;  %548 = vmatpush3.bf16.msra.mxu0 %v598_v15 }
  0x27   :  { %549 = vmatprep.subr.bf16.mxu0 %v657_v0 }
  0x29   :  { %532 = vmatpush3.bf16.msra.mxu1 %v592_v9 }
  0x2a   :  { %533 = vmatprep.subr.bf16.mxu1 %v657_v0  ;;  %550 = vmatpush3.bf16.msra.mxu0 %v599_v16 }
  0x2b   :  { %551 = vmatprep.subr.bf16.mxu0 %v657_v0 }
  0x2d   :  { %534 = vmatpush3.bf16.msra.mxu1 %v593_v10 }
  0x2e   :  { %559 = vmatprep.subr.bf16.mxu1 %v657_v0  ;;  %552 = vmatpush3.bf16.msra.mxu0 %v600_v25 }
  0x2f   :  { %553 = vmatprep.subr.bf16.mxu0 %v657_v0 }
  0x32   :  { %554 = vmatpush3.bf16.msra.mxu0 %v601_v26 }
  0xd4   :  { %v88_v18 = vpop.f32.mrf.mxu0 }
  0xd5   :  { %v89_v19 = vadd.f32 %v454_v17, %v88_v18 }
  0xd6   :  { %v517_v20 = vpop.f32.mrf.mxu0 }
  0xd7   :  { %v94_v21 = vmax.f32 %v89_v19, 0.0 }
  0xd8   :  { %v91_v22 = vpop.f32.mrf.mxu0 }
  0xd9   :  { %v95_v23 = vpack.c.bf16 %v94_v21, %v94_v21 }
  0xda   :  { %v518_v24 = vpop.f32.mrf.mxu0 }
  0xdb   :  { %536 = vmatmul.mubr.bf16.vlgmr.msra.gmra.mxu1 %v95_v23 }
  0xdc   :  { %575 = vmatprep.mubr.msk.bf16.mxu1 %vm658_vm0, %v657_v0  ;;  %560 = vmatpush3.bf16.msra.mxu1 %v602_v27 }
  0xdd   :  { %561 = vmatprep.subr.bf16.mxu1 %v657_v0 }
  0xe0   :  { %562 = vmatpush3.bf16.msra.mxu1 %v603_v28 }
  0xe1   :  { %563 = vmatprep.subr.bf16.mxu1 %v657_v0 }
  0xe4   :  { %564 = vmatpush3.bf16.msra.mxu1 %v604_v29 }
  0xe5   :  { %565 = vmatprep.subr.bf16.mxu1 %v657_v0 }
  0xe8   :  { %566 = vmatpush3.bf16.msra.mxu1 %v605_v30 }
  0xe9   :  { %567 = vmatprep.subr.bf16.mxu1 %v657_v0 }
  0xec   :  { %568 = vmatpush3.bf16.msra.mxu1 %v606_v31 }
  0xed   :  { %569 = vmatprep.subr.bf16.mxu1 %v657_v0 }
  0xf0   :  { %570 = vmatpush3.bf16.msra.mxu1 %v607_v32 }
  0xf1   :  { %571 = vmatprep.subr.bf16.mxu1 %v657_v0 }
  0xf4   :  { %572 = vmatpush3.bf16.msra.mxu1 %v608_v41 }
  0xf5   :  { %573 = vmatprep.subr.bf16.mxu1 %v657_v0 }
  0xf8   :  { %574 = vmatpush3.bf16.msra.mxu1 %v609_v42 }
 0x19b   :  { %v199_v34 = vpop.f32.mrf.mxu1 }
 0x19c   :  { %v200_v35 = vadd.f32 %v457_v33, %v199_v34 }
 0x19d   :  { %v537_v36 = vpop.f32.mrf.mxu1 }
 0x19e   :  { %v205_v37 = vmax.f32 %v200_v35, 0.0 }
 0x19f   :  { %v202_v38 = vpop.f32.mrf.mxu1 }
 0x1a0   :  { %v206_v39 = vpack.c.bf16 %v205_v37, %v205_v37 }
 0x1a1   :  { %v538_v40 = vpop.f32.mrf.mxu1 }
 0x1a2   :  { %556 = vmatmul.mubr.bf16.vlgmr.msra.gmra.mxu0 %v206_v39 }
 0x262   :  { %v311_v44 = vpop.f32.mrf.mxu0 }
 0x263   :  { %v312_v45 = vadd.f32 %v466_v43, %v311_v44 }
 0x264   :  { %v557_v46 = vpop.f32.mrf.mxu0 }
 0x265   :  { %v317_v47 = vmax.f32 %v312_v45, 0.0 }
 0x266   :  { %v314_v48 = vpop.f32.mrf.mxu0 }
 0x267   :  { %v318_v49 = vpack.c.bf16 %v317_v47, %v317_v47 }
 0x268   :  { %v558_v50 = vpop.f32.mrf.mxu0 }
 0x269   :  { %576 = vmatmul.mubr.bf16.vlgmr.msra.gmra.mxu1 %v318_v49 }
 0x329   :  { %v422_v52 = vpop.f32.mrf.mxu1 }
 0x32a   :  { %v423_v53 = vadd.f32 %v475_v51, %v422_v52 }
 0x32b   :  { %v577_v54 = vpop.f32.mrf.mxu1 }
 0x32c   :  { %v428_v55 = vand.u32 2147483647, %v423_v53  ;;  %vm431_vm2 = vcmp.ge.f32.partialorder %v423_v53, 0.0 }
 0x32d   :  { %v425_v56 = vpop.f32.mrf.mxu1 }
 0x32e   :  { %v429_v57 = vmul.f32 0.0078125, %v428_v55 }
 0x32f   :  { %v578_v58 = vpop.f32.mrf.mxu1 }
 0x330   :  { %v430_v59 = vadd.f32 8.0, %v429_v57 }
 0x332   :  { %v432_v60 = vsub.f32 16.0, %v430_v59 }
 0x334   :  { %v433_v61 = vsel %vm431_vm2, %v430_v59, %v432_v60 }
 0x335   :  { %v434_v62 = vmax.f32 %v433_v61, 0.0 }
 0x337   :  { %v435_v63 = vmin.f32 %v434_v62, 16.0 }
 0x339   :  { %v436_v0 = vmul.f32 0.0625, %v435_v63 }
 0x33b   :  { %438 = vst.msk [vmem:[#allocation5] sm:$0xff] %vm437_vm3, %v436_v0 }
 0x33c   :  { %641 = shalt.err (!%p638_p9)
}
 0x33d   :  { %448 = dma.vmem_to_hbm [thread:$0]  %s446_s25, 128, %s776_s5, [#allocation4]  }
 0x33e   :  { %652 = dma.done.wait [#allocation4], 128  }
 0x33f   :  { %653 = vsyncadd [#allocation4], 4294967168 }
 0x340   :  { %452 = vsyncpa [#allocation3], 1 }
 0x341   :  { %453 = vsyncpa [#allocation4], 1 }

</bundles_post_ra>
